<compile_context>
chip_gen: v6e
topology: v6e:2x2x1
jax: 0.10.0
libtpu: 0.0.40
codegen_flags: <defaults>
</compile_context>

<pallas_src>
import functools

import jax
import jax.numpy as jnp
from jax.experimental import pallas as pl
from jax.experimental.pallas import tpu as pltpu

LANE = 128


# ----------------------------------------------------------------------------
# Helpers
# ----------------------------------------------------------------------------
def _round_up(x, m):
    return ((x + m - 1) // m) * m


def _pad2d(a, rows, cols):
    """Zero-pad a 2-D array up to (rows, cols)."""
    return jnp.pad(a, ((0, rows - a.shape[0]), (0, cols - a.shape[1])))


def _full_spec(shape):
    # single-block spec covering the whole array (grid = (1,));
    # full-extent blocks are exempt from the (8, 128) divisibility rule.
    return pl.BlockSpec(shape, lambda i: (0,) * len(shape))


# ----------------------------------------------------------------------------
# Fused Pallas kernel: node embedding + all GIN layers + BN + ReLU
# ----------------------------------------------------------------------------
def gnn_fused_kernel(
    x_ref, a_ref, ef_ref, cnt_ref,
    wn_ref, bn_ref,
    we_ref, be_ref, w1_ref, b1_ref, w2_ref, b2_ref, gamma_ref, beta_ref,
    o_ref,
    *, num_layer: int, bond_dim: int, eps: float = 1e-5,
):
    # Node embedding: Linear(atom_dim -> emb)   (bf16 MXU feed, f32 accumulate)
    h = (
        jnp.dot(x_ref[...], wn_ref[...], preferred_element_type=jnp.float32)
        + bn_ref[...]
    )

    a = a_ref[...]        # (N, N)  bf16 adjacency counts (real edges only)
    ef = ef_ref[...]      # (N, bond_dim) f32: per-node sum of incident edge_attr + [4, 0]
    cnt = cnt_ref[...]    # (N, 1)  f32: in-degree + 1 (self loop)

    for l in range(num_layer):          # unrolled; weights are stacked along axis 0
        we = we_ref[l]                  # (bond_dim, emb_p) f32
        be = be_ref[l]                  # (1, emb_p)        f32

        # Edge-embedding contribution, pre-reduced per node (linearity of Linear):
        #   sum_{e->v} Linear(edge_attr_e) = (sum_{e->v} edge_attr_e) @ We + count_v * be
        # bond_dim = 2 -> two VPU broadcast-FMAs instead of a K=2 MXU contraction.
        edge_term = cnt * be
        for k in range(bond_dim):
            edge_term = edge_term + ef[:, k:k + 1] * we[k:k + 1, :]

        # add-aggregation: real edges as one bf16 MXU matmul, self loop added in f32.
        aggr = (
            jnp.dot(a, h.astype(jnp.bfloat16), preferred_element_type=jnp.float32)
            + h
            + edge_term
        )

        # GIN MLP: Linear -> ReLU -> Linear   (bf16 MXU feeds, f32 accumulation)
        h1 = jnp.maximum(
            jnp.dot(aggr.astype(jnp.bfloat16), w1_ref[l],
                    preferred_element_type=jnp.float32) + b1_ref[l],
            0.0,
        )
        h2 = (
            jnp.dot(h1.astype(jnp.bfloat16), w2_ref[l],
                    preferred_element_type=jnp.float32) + b2_ref[l]
        )

        # BatchNorm1d (training-mode batch stats over the node axis, biased variance), f32.
        mean = jnp.mean(h2, axis=0, keepdims=True)
        var = jnp.mean((h2 - mean) ** 2, axis=0, keepdims=True)
        h = (h2 - mean) * jax.lax.rsqrt(var + eps) * gamma_ref[l] + beta_ref[l]
        if l != num_layer - 1:
            h = jnp.maximum(h, 0.0)
        # TODO(synk): dropout is identity here (drop_ratio=0.0 in the reference config).

    o_ref[...] = h        # JK == 'last'


# ----------------------------------------------------------------------------
# Graph pre-reduction (XLA, runs once per graph; cacheable when graph is static)
# ----------------------------------------------------------------------------
def build_graph_operators(edge_index, edge_attr, num_nodes):
    """Pre-reduce the graph structure: no one_hot, no dense M, no E axis in the kernel.

    a[v, u]  = number of real edges u -> v      (cast to bf16; exact for counts < 256)
    ef[v, :] = sum over edges into v of edge_attr, plus the self-loop attr [4, 0]
    cnt[v]   = in-degree(v) + 1                 (self loop; multiplies the edge-emb bias)
    """
    src, dst = edge_index[0], edge_index[1]
    a = jnp.zeros((num_nodes, num_nodes), jnp.float32).at[dst, src].add(1.0)
    deg = jnp.zeros((num_nodes,), jnp.float32).at[dst].add(1.0)
    ef = jnp.zeros((num_nodes, edge_attr.shape[1]), jnp.float32).at[dst].add(edge_attr)
    ef = ef.at[:, 0].add(4.0)                    # self-loop attribute folded analytically
    cnt = (deg + 1.0)[:, None]
    return a.astype(jnp.bfloat16), ef, cnt


# ----------------------------------------------------------------------------
# Parameter init (deterministic, Xavier uniform like the reference)
# ----------------------------------------------------------------------------
def xavier_uniform(key, fan_in, fan_out):
    limit = (6.0 / (fan_in + fan_out)) ** 0.5
    return jax.random.uniform(
        key, (fan_in, fan_out), jnp.float32, minval=-limit, maxval=limit
    )


def init_gnn_params(key, num_layer, atom_dim, bond_dim, emb_dim):
    keys = jax.random.split(key, 1 + 3 * num_layer)
    params = {}
    params["node_w"] = xavier_uniform(keys[0], atom_dim, emb_dim)
    params["node_b"] = jnp.zeros((1, emb_dim), jnp.float32)
    layers = []
    for layer in range(num_layer):
        k_e, k_1, k_2 = keys[1 + 3 * layer: 4 + 3 * layer]
        we = xavier_uniform(k_e, bond_dim, emb_dim)
        be = jnp.zeros((1, emb_dim), jnp.float32)
        w1 = xavier_uniform(k_1, emb_dim, 2 * emb_dim)
        b1 = jnp.zeros((1, 2 * emb_dim), jnp.float32)
        w2 = xavier_uniform(k_2, 2 * emb_dim, emb_dim)
        b2 = jnp.zeros((1, emb_dim), jnp.float32)
        gamma = jnp.ones((1, emb_dim), jnp.float32)
        beta = jnp.zeros((1, emb_dim), jnp.float32)
        layers.append((we, be, w1, b1, w2, b2, gamma, beta))
    params["layers"] = layers
    return params


# ----------------------------------------------------------------------------
# GNN forward: pad/stack/cast params, then one fused pallas_call
# ----------------------------------------------------------------------------
@functools.partial(jax.jit, static_argnums=(4,))
def gnn_forward(params, x, edge_index, edge_attr, num_layer):
    n, atom_dim = x.shape
    bond_dim = edge_attr.shape[1]
    emb_dim = params["node_w"].shape[1]
    atom_p = _round_up(atom_dim, LANE)
    emb_p = _round_up(emb_dim, LANE)
    hid_p = _round_up(2 * emb_dim, LANE)

    a_bf16, ef, cnt = build_graph_operators(edge_index, edge_attr, n)

    # Zero-pad feature dims to 128 lanes (lane-dense vregs, unmasked vst, better MXU fill).
    # Padded columns stay exactly 0 through every layer and are sliced off at the end.
    x_p = _pad2d(x, n, atom_p).astype(jnp.bfloat16)
    wn = _pad2d(params["node_w"], atom_p, emb_p).astype(jnp.bfloat16)
    bn = _pad2d(params["node_b"], 1, emb_p)

    layers = params["layers"]
    we = jnp.stack([_pad2d(p[0], bond_dim, emb_p) for p in layers])                 # f32 (VPU path)
    be = jnp.stack([_pad2d(p[1], 1, emb_p) for p in layers])
    w1 = jnp.stack([_pad2d(p[2], emb_p, hid_p) for p in layers]).astype(jnp.bfloat16)
    b1 = jnp.stack([_pad2d(p[3], 1, hid_p) for p in layers])
    w2 = jnp.stack([_pad2d(p[4], hid_p, emb_p) for p in layers]).astype(jnp.bfloat16)
    b2 = jnp.stack([_pad2d(p[5], 1, emb_p) for p in layers])
    gamma = jnp.stack([_pad2d(p[6], 1, emb_p) for p in layers])
    beta = jnp.stack([_pad2d(p[7], 1, emb_p) for p in layers])

    kernel = functools.partial(
        gnn_fused_kernel, num_layer=num_layer, bond_dim=bond_dim
    )
    args = (x_p, a_bf16, ef, cnt, wn, bn, we, be, w1, b1, w2, b2, gamma, beta)
    out = pl.pallas_call(
        kernel,
        grid=(1,),
        out_shape=jax.ShapeDtypeStruct((n, emb_p), jnp.float32),
        in_specs=[_full_spec(v.shape) for v in args],
        out_specs=_full_spec((n, emb_p)),
        compiler_params=pltpu.CompilerParams(dimension_semantics=("arbitrary",)),
    )(*args)
    # TODO(synk): for large N, tile destination-node rows (f32 accumulator scratch +
    # two-pass cross-tile BatchNorm) and shard that axis across v7x's two TensorCores;
    # a single full-graph block is the right shape at this scale.
    return out[:, :emb_dim]


# ----------------------------------------------------------------------------
if __name__ == "__main__":
    NUM_LAYER = 2
    EMB_DIM = 32
    ATOM_DIM = 16   # get_atom_features_dim()
    BOND_DIM = 2    # get_bond_features_dim() (matches self_loop_attr zeros(N, 2))
    N_NODES = 16
    N_EDGES = 24

    key = jax.random.PRNGKey(0)
    k_x, k_e, k_a, k_p = jax.random.split(key, 4)

    x = jax.random.normal(k_x, (N_NODES, ATOM_DIM), jnp.float32)
    edge_index = jax.random.randint(k_e, (2, N_EDGES), 0, N_NODES, dtype=jnp.int32)
    edge_attr = jax.random.normal(k_a, (N_EDGES, BOND_DIM), jnp.float32)

    params = init_gnn_params(k_p, NUM_LAYER, ATOM_DIM, BOND_DIM, EMB_DIM)

    out = gnn_forward(params, x, edge_index, edge_attr, NUM_LAYER)
    out = jax.block_until_ready(out)
    assert out.shape == (N_NODES, EMB_DIM)
    assert bool(jnp.all(jnp.isfinite(out)))
    print("KERNEL_OK")
</pallas_src>

<mosaic_0001>
module attributes {stable_mosaic.version = 11 : i64} {
  func.func private @main(%arg0: i32) attributes {dimension_semantics = [#tpu.dimension_semantics<core_parallel>], iteration_bounds = array<i64: 2>, tpu.core_type = #tpu.core_type<sc_scalar_subcore>, window_params = []} {
    return
  }
}

module attributes {stable_mosaic.version = 11 : i64} {
  func.func private @main(%arg0: i32) attributes {dimension_semantics = [#tpu.dimension_semantics<core_parallel>], iteration_bounds = array<i64: 2>, tpu.core_type = #tpu.core_type<sc_scalar_subcore>, window_params = []} {
    return
  }
}

module attributes {stable_mosaic.version = 11 : i64} {
  func.func @gnn_fused_kernel(%arg0: i32, %arg1: memref<16x128xbf16, #tpu.memory_space<vmem>>, %arg2: memref<16x16xbf16, #tpu.memory_space<vmem>>, %arg3: memref<16x2xf32, #tpu.memory_space<vmem>>, %arg4: memref<16x1xf32, #tpu.memory_space<vmem>>, %arg5: memref<128x128xbf16, #tpu.memory_space<vmem>>, %arg6: memref<1x128xf32, #tpu.memory_space<vmem>>, %arg7: memref<2x2x128xf32, #tpu.memory_space<vmem>>, %arg8: memref<2x1x128xf32, #tpu.memory_space<vmem>>, %arg9: memref<2x128x128xbf16, #tpu.memory_space<vmem>>, %arg10: memref<2x1x128xf32, #tpu.memory_space<vmem>>, %arg11: memref<2x128x128xbf16, #tpu.memory_space<vmem>>, %arg12: memref<2x1x128xf32, #tpu.memory_space<vmem>>, %arg13: memref<2x1x128xf32, #tpu.memory_space<vmem>>, %arg14: memref<2x1x128xf32, #tpu.memory_space<vmem>>, %arg15: memref<16x128xf32, #tpu.memory_space<vmem>>) attributes {dimension_semantics = [#tpu.dimension_semantics<arbitrary>], iteration_bounds = array<i64: 1>, scalar_prefetch = 0 : i64, scratch_operands = 0 : i64, tpu.core_type = #tpu.core_type<tc>, window_params = [{pipeline_mode = #tpu.pipeline_mode<synchronous>, transform_indices = @transform_0, window_bounds = array<i64: 16, 128>}, {pipeline_mode = #tpu.pipeline_mode<synchronous>, transform_indices = @transform_1, window_bounds = array<i64: 16, 16>}, {pipeline_mode = #tpu.pipeline_mode<synchronous>, transform_indices = @transform_2, window_bounds = array<i64: 16, 2>}, {pipeline_mode = #tpu.pipeline_mode<synchronous>, transform_indices = @transform_3, window_bounds = array<i64: 16, 1>}, {pipeline_mode = #tpu.pipeline_mode<synchronous>, transform_indices = @transform_4, window_bounds = array<i64: 128, 128>}, {pipeline_mode = #tpu.pipeline_mode<synchronous>, transform_indices = @transform_5, window_bounds = array<i64: 1, 128>}, {pipeline_mode = #tpu.pipeline_mode<synchronous>, transform_indices = @transform_6, window_bounds = array<i64: 2, 2, 128>}, {pipeline_mode = #tpu.pipeline_mode<synchronous>, transform_indices = @transform_7, window_bounds = array<i64: 2, 1, 128>}, {pipeline_mode = #tpu.pipeline_mode<synchronous>, transform_indices = @transform_8, window_bounds = array<i64: 2, 128, 128>}, {pipeline_mode = #tpu.pipeline_mode<synchronous>, transform_indices = @transform_9, window_bounds = array<i64: 2, 1, 128>}, {pipeline_mode = #tpu.pipeline_mode<synchronous>, transform_indices = @transform_10, window_bounds = array<i64: 2, 128, 128>}, {pipeline_mode = #tpu.pipeline_mode<synchronous>, transform_indices = @transform_11, window_bounds = array<i64: 2, 1, 128>}, {pipeline_mode = #tpu.pipeline_mode<synchronous>, transform_indices = @transform_12, window_bounds = array<i64: 2, 1, 128>}, {pipeline_mode = #tpu.pipeline_mode<synchronous>, transform_indices = @transform_13, window_bounds = array<i64: 2, 1, 128>}, {pipeline_mode = #tpu.pipeline_mode<synchronous>, transform_indices = @transform_14, window_bounds = array<i64: 16, 128>}]} {
    %c0 = arith.constant 0 : index
    %c0_0 = arith.constant 0 : index
    %0 = vector.load %arg1[%c0, %c0_0] : memref<16x128xbf16, #tpu.memory_space<vmem>>, vector<16x128xbf16>
    %c0_1 = arith.constant 0 : index
    %c0_2 = arith.constant 0 : index
    %1 = vector.load %arg5[%c0_1, %c0_2] : memref<128x128xbf16, #tpu.memory_space<vmem>>, vector<128x128xbf16>
    %cst = arith.constant dense<0.000000e+00> : vector<16x128xf32>
    %2 = tpu.matmul %0, %1, %cst {dimension_numbers = #tpu.dot_dimension_numbers<[1], [0], [0], [1], [0, 0, 1, 1], [], []>} : vector<16x128xbf16>, vector<128x128xbf16>, vector<16x128xf32> -> vector<16x128xf32>
    %c0_3 = arith.constant 0 : index
    %c0_4 = arith.constant 0 : index
    %3 = vector.load %arg6[%c0_3, %c0_4] : memref<1x128xf32, #tpu.memory_space<vmem>>, vector<1x128xf32>
    %4 = vector.broadcast %3 : vector<1x128xf32> to vector<16x128xf32>
    %5 = arith.addf %2, %4 : vector<16x128xf32>
    %c0_5 = arith.constant 0 : index
    %c0_6 = arith.constant 0 : index
    %6 = vector.load %arg2[%c0_5, %c0_6] : memref<16x16xbf16, #tpu.memory_space<vmem>>, vector<16x16xbf16>
    %c0_7 = arith.constant 0 : index
    %c0_8 = arith.constant 0 : index
    %7 = vector.load %arg3[%c0_7, %c0_8] : memref<16x2xf32, #tpu.memory_space<vmem>>, vector<16x2xf32>
    %c0_9 = arith.constant 0 : index
    %c0_10 = arith.constant 0 : index
    %8 = vector.load %arg4[%c0_9, %c0_10] : memref<16x1xf32, #tpu.memory_space<vmem>>, vector<16x1xf32>
    %c0_11 = arith.constant 0 : index
    %c0_12 = arith.constant 0 : index
    %c0_13 = arith.constant 0 : index
    %9 = vector.load %arg7[%c0_11, %c0_12, %c0_13] : memref<2x2x128xf32, #tpu.memory_space<vmem>>, vector<1x2x128xf32>
    %10 = vector.shape_cast %9 : vector<1x2x128xf32> to vector<2x128xf32>
    %c0_14 = arith.constant 0 : index
    %c0_15 = arith.constant 0 : index
    %c0_16 = arith.constant 0 : index
    %11 = vector.load %arg8[%c0_14, %c0_15, %c0_16] : memref<2x1x128xf32, #tpu.memory_space<vmem>>, vector<1x1x128xf32>
    %12 = vector.shape_cast %11 : vector<1x1x128xf32> to vector<1x128xf32>
    %13 = vector.broadcast %8 : vector<16x1xf32> to vector<16x128xf32>
    %14 = vector.broadcast %12 : vector<1x128xf32> to vector<16x128xf32>
    %15 = arith.mulf %13, %14 : vector<16x128xf32>
    %16 = vector.extract_strided_slice %7 {offsets = [0, 0], sizes = [16, 1], strides = [1, 1]} : vector<16x2xf32> to vector<16x1xf32>
    %17 = vector.extract_strided_slice %10 {offsets = [0, 0], sizes = [1, 128], strides = [1, 1]} : vector<2x128xf32> to vector<1x128xf32>
    %18 = vector.broadcast %16 : vector<16x1xf32> to vector<16x128xf32>
    %19 = vector.broadcast %17 : vector<1x128xf32> to vector<16x128xf32>
    %20 = arith.mulf %18, %19 : vector<16x128xf32>
    %21 = arith.addf %15, %20 : vector<16x128xf32>
    %22 = vector.extract_strided_slice %7 {offsets = [0, 1], sizes = [16, 1], strides = [1, 1]} : vector<16x2xf32> to vector<16x1xf32>
    %23 = vector.extract_strided_slice %10 {offsets = [1, 0], sizes = [1, 128], strides = [1, 1]} : vector<2x128xf32> to vector<1x128xf32>
    %24 = vector.broadcast %22 : vector<16x1xf32> to vector<16x128xf32>
    %25 = vector.broadcast %23 : vector<1x128xf32> to vector<16x128xf32>
    %26 = arith.mulf %24, %25 : vector<16x128xf32>
    %27 = arith.addf %21, %26 : vector<16x128xf32>
    %28 = arith.truncf %5 : vector<16x128xf32> to vector<16x128xbf16>
    %cst_17 = arith.constant dense<0.000000e+00> : vector<16x128xf32>
    %29 = tpu.matmul %6, %28, %cst_17 {dimension_numbers = #tpu.dot_dimension_numbers<[1], [0], [0], [1], [0, 0, 1, 1], [], []>} : vector<16x16xbf16>, vector<16x128xbf16>, vector<16x128xf32> -> vector<16x128xf32>
    %30 = arith.addf %29, %5 : vector<16x128xf32>
    %31 = arith.addf %30, %27 : vector<16x128xf32>
    %32 = arith.truncf %31 : vector<16x128xf32> to vector<16x128xbf16>
    %c0_18 = arith.constant 0 : index
    %c0_19 = arith.constant 0 : index
    %c0_20 = arith.constant 0 : index
    %33 = vector.load %arg9[%c0_18, %c0_19, %c0_20] : memref<2x128x128xbf16, #tpu.memory_space<vmem>>, vector<1x128x128xbf16>
    %34 = vector.shape_cast %33 : vector<1x128x128xbf16> to vector<128x128xbf16>
    %cst_21 = arith.constant dense<0.000000e+00> : vector<16x128xf32>
    %35 = tpu.matmul %32, %34, %cst_21 {dimension_numbers = #tpu.dot_dimension_numbers<[1], [0], [0], [1], [0, 0, 1, 1], [], []>} : vector<16x128xbf16>, vector<128x128xbf16>, vector<16x128xf32> -> vector<16x128xf32>
    %c0_22 = arith.constant 0 : index
    %c0_23 = arith.constant 0 : index
    %c0_24 = arith.constant 0 : index
    %36 = vector.load %arg10[%c0_22, %c0_23, %c0_24] : memref<2x1x128xf32, #tpu.memory_space<vmem>>, vector<1x1x128xf32>
    %37 = vector.shape_cast %36 : vector<1x1x128xf32> to vector<1x128xf32>
    %38 = vector.broadcast %37 : vector<1x128xf32> to vector<16x128xf32>
    %39 = arith.addf %35, %38 : vector<16x128xf32>
    %cst_25 = arith.constant 0.000000e+00 : f32
    %40 = vector.broadcast %cst_25 : f32 to vector<16x128xf32>
    %41 = arith.maximumf %39, %40 : vector<16x128xf32>
    %42 = arith.truncf %41 : vector<16x128xf32> to vector<16x128xbf16>
    %c0_26 = arith.constant 0 : index
    %c0_27 = arith.constant 0 : index
    %c0_28 = arith.constant 0 : index
    %43 = vector.load %arg11[%c0_26, %c0_27, %c0_28] : memref<2x128x128xbf16, #tpu.memory_space<vmem>>, vector<1x128x128xbf16>
    %44 = vector.shape_cast %43 : vector<1x128x128xbf16> to vector<128x128xbf16>
    %cst_29 = arith.constant dense<0.000000e+00> : vector<16x128xf32>
    %45 = tpu.matmul %42, %44, %cst_29 {dimension_numbers = #tpu.dot_dimension_numbers<[1], [0], [0], [1], [0, 0, 1, 1], [], []>} : vector<16x128xbf16>, vector<128x128xbf16>, vector<16x128xf32> -> vector<16x128xf32>
    %c0_30 = arith.constant 0 : index
    %c0_31 = arith.constant 0 : index
    %c0_32 = arith.constant 0 : index
    %46 = vector.load %arg12[%c0_30, %c0_31, %c0_32] : memref<2x1x128xf32, #tpu.memory_space<vmem>>, vector<1x1x128xf32>
    %47 = vector.shape_cast %46 : vector<1x1x128xf32> to vector<1x128xf32>
    %48 = vector.broadcast %47 : vector<1x128xf32> to vector<16x128xf32>
    %49 = arith.addf %45, %48 : vector<16x128xf32>
    %cst_33 = arith.constant dense<0.000000e+00> : vector<128xf32>
    %50 = vector.multi_reduction <add>, %49, %cst_33 [0] : vector<16x128xf32> to vector<128xf32>
    %51 = vector.shape_cast %50 : vector<128xf32> to vector<1x128xf32>
    %cst_34 = arith.constant 1.600000e+01 : f32
    %52 = vector.broadcast %cst_34 : f32 to vector<1x128xf32>
    %53 = arith.divf %51, %52 : vector<1x128xf32>
    %54 = vector.broadcast %53 : vector<1x128xf32> to vector<16x128xf32>
    %55 = arith.subf %49, %54 : vector<16x128xf32>
    %56 = arith.mulf %55, %55 : vector<16x128xf32>
    %cst_35 = arith.constant dense<0.000000e+00> : vector<128xf32>
    %57 = vector.multi_reduction <add>, %56, %cst_35 [0] : vector<16x128xf32> to vector<128xf32>
    %58 = vector.shape_cast %57 : vector<128xf32> to vector<1x128xf32>
    %cst_36 = arith.constant 1.600000e+01 : f32
    %59 = vector.broadcast %cst_36 : f32 to vector<1x128xf32>
    %60 = arith.divf %58, %59 : vector<1x128xf32>
    %61 = vector.broadcast %53 : vector<1x128xf32> to vector<16x128xf32>
    %62 = arith.subf %49, %61 : vector<16x128xf32>
    %cst_37 = arith.constant 9.99999974E-6 : f32
    %63 = vector.broadcast %cst_37 : f32 to vector<1x128xf32>
    %64 = arith.addf %60, %63 : vector<1x128xf32>
    %65 = math.rsqrt %64 : vector<1x128xf32>
    %66 = vector.broadcast %65 : vector<1x128xf32> to vector<16x128xf32>
    %67 = arith.mulf %62, %66 : vector<16x128xf32>
    %c0_38 = arith.constant 0 : index
    %c0_39 = arith.constant 0 : index
    %c0_40 = arith.constant 0 : index
    %68 = vector.load %arg13[%c0_38, %c0_39, %c0_40] : memref<2x1x128xf32, #tpu.memory_space<vmem>>, vector<1x1x128xf32>
    %69 = vector.shape_cast %68 : vector<1x1x128xf32> to vector<1x128xf32>
    %70 = vector.broadcast %69 : vector<1x128xf32> to vector<16x128xf32>
    %71 = arith.mulf %67, %70 : vector<16x128xf32>
    %c0_41 = arith.constant 0 : index
    %c0_42 = arith.constant 0 : index
    %c0_43 = arith.constant 0 : index
    %72 = vector.load %arg14[%c0_41, %c0_42, %c0_43] : memref<2x1x128xf32, #tpu.memory_space<vmem>>, vector<1x1x128xf32>
    %73 = vector.shape_cast %72 : vector<1x1x128xf32> to vector<1x128xf32>
    %74 = vector.broadcast %73 : vector<1x128xf32> to vector<16x128xf32>
    %75 = arith.addf %71, %74 : vector<16x128xf32>
    %cst_44 = arith.constant 0.000000e+00 : f32
    %76 = vector.broadcast %cst_44 : f32 to vector<16x128xf32>
    %77 = arith.maximumf %75, %76 : vector<16x128xf32>
    %c1 = arith.constant 1 : index
    %c0_45 = arith.constant 0 : index
    %c0_46 = arith.constant 0 : index
    %78 = vector.load %arg7[%c1, %c0_45, %c0_46] : memref<2x2x128xf32, #tpu.memory_space<vmem>>, vector<1x2x128xf32>
    %79 = vector.shape_cast %78 : vector<1x2x128xf32> to vector<2x128xf32>
    %c1_47 = arith.constant 1 : index
    %c0_48 = arith.constant 0 : index
    %c0_49 = arith.constant 0 : index
    %80 = vector.load %arg8[%c1_47, %c0_48, %c0_49] : memref<2x1x128xf32, #tpu.memory_space<vmem>>, vector<1x1x128xf32>
    %81 = vector.shape_cast %80 : vector<1x1x128xf32> to vector<1x128xf32>
    %82 = vector.broadcast %8 : vector<16x1xf32> to vector<16x128xf32>
    %83 = vector.broadcast %81 : vector<1x128xf32> to vector<16x128xf32>
    %84 = arith.mulf %82, %83 : vector<16x128xf32>
    %85 = vector.extract_strided_slice %7 {offsets = [0, 0], sizes = [16, 1], strides = [1, 1]} : vector<16x2xf32> to vector<16x1xf32>
    %86 = vector.extract_strided_slice %79 {offsets = [0, 0], sizes = [1, 128], strides = [1, 1]} : vector<2x128xf32> to vector<1x128xf32>
    %87 = vector.broadcast %85 : vector<16x1xf32> to vector<16x128xf32>
    %88 = vector.broadcast %86 : vector<1x128xf32> to vector<16x128xf32>
    %89 = arith.mulf %87, %88 : vector<16x128xf32>
    %90 = arith.addf %84, %89 : vector<16x128xf32>
    %91 = vector.extract_strided_slice %7 {offsets = [0, 1], sizes = [16, 1], strides = [1, 1]} : vector<16x2xf32> to vector<16x1xf32>
    %92 = vector.extract_strided_slice %79 {offsets = [1, 0], sizes = [1, 128], strides = [1, 1]} : vector<2x128xf32> to vector<1x128xf32>
    %93 = vector.broadcast %91 : vector<16x1xf32> to vector<16x128xf32>
    %94 = vector.broadcast %92 : vector<1x128xf32> to vector<16x128xf32>
    %95 = arith.mulf %93, %94 : vector<16x128xf32>
    %96 = arith.addf %90, %95 : vector<16x128xf32>
    %97 = arith.truncf %77 : vector<16x128xf32> to vector<16x128xbf16>
    %cst_50 = arith.constant dense<0.000000e+00> : vector<16x128xf32>
    %98 = tpu.matmul %6, %97, %cst_50 {dimension_numbers = #tpu.dot_dimension_numbers<[1], [0], [0], [1], [0, 0, 1, 1], [], []>} : vector<16x16xbf16>, vector<16x128xbf16>, vector<16x128xf32> -> vector<16x128xf32>
    %99 = arith.addf %98, %77 : vector<16x128xf32>
    %100 = arith.addf %99, %96 : vector<16x128xf32>
    %101 = arith.truncf %100 : vector<16x128xf32> to vector<16x128xbf16>
    %c1_51 = arith.constant 1 : index
    %c0_52 = arith.constant 0 : index
    %c0_53 = arith.constant 0 : index
    %102 = vector.load %arg9[%c1_51, %c0_52, %c0_53] : memref<2x128x128xbf16, #tpu.memory_space<vmem>>, vector<1x128x128xbf16>
    %103 = vector.shape_cast %102 : vector<1x128x128xbf16> to vector<128x128xbf16>
    %cst_54 = arith.constant dense<0.000000e+00> : vector<16x128xf32>
    %104 = tpu.matmul %101, %103, %cst_54 {dimension_numbers = #tpu.dot_dimension_numbers<[1], [0], [0], [1], [0, 0, 1, 1], [], []>} : vector<16x128xbf16>, vector<128x128xbf16>, vector<16x128xf32> -> vector<16x128xf32>
    %c1_55 = arith.constant 1 : index
    %c0_56 = arith.constant 0 : index
    %c0_57 = arith.constant 0 : index
    %105 = vector.load %arg10[%c1_55, %c0_56, %c0_57] : memref<2x1x128xf32, #tpu.memory_space<vmem>>, vector<1x1x128xf32>
    %106 = vector.shape_cast %105 : vector<1x1x128xf32> to vector<1x128xf32>
    %107 = vector.broadcast %106 : vector<1x128xf32> to vector<16x128xf32>
    %108 = arith.addf %104, %107 : vector<16x128xf32>
    %cst_58 = arith.constant 0.000000e+00 : f32
    %109 = vector.broadcast %cst_58 : f32 to vector<16x128xf32>
    %110 = arith.maximumf %108, %109 : vector<16x128xf32>
    %111 = arith.truncf %110 : vector<16x128xf32> to vector<16x128xbf16>
    %c1_59 = arith.constant 1 : index
    %c0_60 = arith.constant 0 : index
    %c0_61 = arith.constant 0 : index
    %112 = vector.load %arg11[%c1_59, %c0_60, %c0_61] : memref<2x128x128xbf16, #tpu.memory_space<vmem>>, vector<1x128x128xbf16>
    %113 = vector.shape_cast %112 : vector<1x128x128xbf16> to vector<128x128xbf16>
    %cst_62 = arith.constant dense<0.000000e+00> : vector<16x128xf32>
    %114 = tpu.matmul %111, %113, %cst_62 {dimension_numbers = #tpu.dot_dimension_numbers<[1], [0], [0], [1], [0, 0, 1, 1], [], []>} : vector<16x128xbf16>, vector<128x128xbf16>, vector<16x128xf32> -> vector<16x128xf32>
    %c1_63 = arith.constant 1 : index
    %c0_64 = arith.constant 0 : index
    %c0_65 = arith.constant 0 : index
    %115 = vector.load %arg12[%c1_63, %c0_64, %c0_65] : memref<2x1x128xf32, #tpu.memory_space<vmem>>, vector<1x1x128xf32>
    %116 = vector.shape_cast %115 : vector<1x1x128xf32> to vector<1x128xf32>
    %117 = vector.broadcast %116 : vector<1x128xf32> to vector<16x128xf32>
    %118 = arith.addf %114, %117 : vector<16x128xf32>
    %cst_66 = arith.constant dense<0.000000e+00> : vector<128xf32>
    %119 = vector.multi_reduction <add>, %118, %cst_66 [0] : vector<16x128xf32> to vector<128xf32>
    %120 = vector.shape_cast %119 : vector<128xf32> to vector<1x128xf32>
    %cst_67 = arith.constant 1.600000e+01 : f32
    %121 = vector.broadcast %cst_67 : f32 to vector<1x128xf32>
    %122 = arith.divf %120, %121 : vector<1x128xf32>
    %123 = vector.broadcast %122 : vector<1x128xf32> to vector<16x128xf32>
    %124 = arith.subf %118, %123 : vector<16x128xf32>
    %125 = arith.mulf %124, %124 : vector<16x128xf32>
    %cst_68 = arith.constant dense<0.000000e+00> : vector<128xf32>
    %126 = vector.multi_reduction <add>, %125, %cst_68 [0] : vector<16x128xf32> to vector<128xf32>
    %127 = vector.shape_cast %126 : vector<128xf32> to vector<1x128xf32>
    %cst_69 = arith.constant 1.600000e+01 : f32
    %128 = vector.broadcast %cst_69 : f32 to vector<1x128xf32>
    %129 = arith.divf %127, %128 : vector<1x128xf32>
    %130 = vector.broadcast %122 : vector<1x128xf32> to vector<16x128xf32>
    %131 = arith.subf %118, %130 : vector<16x128xf32>
    %cst_70 = arith.constant 9.99999974E-6 : f32
    %132 = vector.broadcast %cst_70 : f32 to vector<1x128xf32>
    %133 = arith.addf %129, %132 : vector<1x128xf32>
    %134 = math.rsqrt %133 : vector<1x128xf32>
    %135 = vector.broadcast %134 : vector<1x128xf32> to vector<16x128xf32>
    %136 = arith.mulf %131, %135 : vector<16x128xf32>
    %c1_71 = arith.constant 1 : index
    %c0_72 = arith.constant 0 : index
    %c0_73 = arith.constant 0 : index
    %137 = vector.load %arg13[%c1_71, %c0_72, %c0_73] : memref<2x1x128xf32, #tpu.memory_space<vmem>>, vector<1x1x128xf32>
    %138 = vector.shape_cast %137 : vector<1x1x128xf32> to vector<1x128xf32>
    %139 = vector.broadcast %138 : vector<1x128xf32> to vector<16x128xf32>
    %140 = arith.mulf %136, %139 : vector<16x128xf32>
    %c1_74 = arith.constant 1 : index
    %c0_75 = arith.constant 0 : index
    %c0_76 = arith.constant 0 : index
    %141 = vector.load %arg14[%c1_74, %c0_75, %c0_76] : memref<2x1x128xf32, #tpu.memory_space<vmem>>, vector<1x1x128xf32>
    %142 = vector.shape_cast %141 : vector<1x1x128xf32> to vector<1x128xf32>
    %143 = vector.broadcast %142 : vector<1x128xf32> to vector<16x128xf32>
    %144 = arith.addf %140, %143 : vector<16x128xf32>
    %c0_77 = arith.constant 0 : index
    %c0_78 = arith.constant 0 : index
    %145 = vector.load %arg15[%c0_77, %c0_78] : memref<16x128xf32, #tpu.memory_space<vmem>>, vector<16x128xf32>
    tpu.vector_store %arg15[%c0_77, %c0_78], %144 {strides = array<i32>} : memref<16x128xf32, #tpu.memory_space<vmem>>, vector<16x128xf32>,
    return
  }
  func.func @transform_0(%arg0: i32) -> (i32, i32) {
    %c0_i32 = arith.constant 0 : i32
    %c0_i32_0 = arith.constant 0 : i32
    %c0_i32_1 = arith.constant 0 : i32
    return %c0_i32, %c0_i32_0 : i32, i32
  }
  func.func @transform_1(%arg0: i32) -> (i32, i32) {
    %c0_i32 = arith.constant 0 : i32
    %c0_i32_0 = arith.constant 0 : i32
    %c0_i32_1 = arith.constant 0 : i32
    return %c0_i32, %c0_i32_0 : i32, i32
  }
  func.func @transform_2(%arg0: i32) -> (i32, i32) {
    %c0_i32 = arith.constant 0 : i32
    %c0_i32_0 = arith.constant 0 : i32
    %c0_i32_1 = arith.constant 0 : i32
    return %c0_i32, %c0_i32_0 : i32, i32
  }
  func.func @transform_3(%arg0: i32) -> (i32, i32) {
    %c0_i32 = arith.constant 0 : i32
    %c0_i32_0 = arith.constant 0 : i32
    %c0_i32_1 = arith.constant 0 : i32
    return %c0_i32, %c0_i32_0 : i32, i32
  }
  func.func @transform_4(%arg0: i32) -> (i32, i32) {
    %c0_i32 = arith.constant 0 : i32
    %c0_i32_0 = arith.constant 0 : i32
    %c0_i32_1 = arith.constant 0 : i32
    return %c0_i32, %c0_i32_0 : i32, i32
  }
  func.func @transform_5(%arg0: i32) -> (i32, i32) {
    %c0_i32 = arith.constant 0 : i32
    %c0_i32_0 = arith.constant 0 : i32
    %c0_i32_1 = arith.constant 0 : i32
    return %c0_i32, %c0_i32_0 : i32, i32
  }
  func.func @transform_6(%arg0: i32) -> (i32, i32, i32) {
    %c0_i32 = arith.constant 0 : i32
    %c0_i32_0 = arith.constant 0 : i32
    %c0_i32_1 = arith.constant 0 : i32
    %c0_i32_2 = arith.constant 0 : i32
    return %c0_i32, %c0_i32_0, %c0_i32_1 : i32, i32, i32
  }
  func.func @transform_7(%arg0: i32) -> (i32, i32, i32) {
    %c0_i32 = arith.constant 0 : i32
    %c0_i32_0 = arith.constant 0 : i32
    %c0_i32_1 = arith.constant 0 : i32
    %c0_i32_2 = arith.constant 0 : i32
    return %c0_i32, %c0_i32_0, %c0_i32_1 : i32, i32, i32
  }
  func.func @transform_8(%arg0: i32) -> (i32, i32, i32) {
    %c0_i32 = arith.constant 0 : i32
    %c0_i32_0 = arith.constant 0 : i32
    %c0_i32_1 = arith.constant 0 : i32
    %c0_i32_2 = arith.constant 0 : i32
    return %c0_i32, %c0_i32_0, %c0_i32_1 : i32, i32, i32
  }
  func.func @transform_9(%arg0: i32) -> (i32, i32, i32) {
    %c0_i32 = arith.constant 0 : i32
    %c0_i32_0 = arith.constant 0 : i32
    %c0_i32_1 = arith.constant 0 : i32
    %c0_i32_2 = arith.constant 0 : i32
    return %c0_i32, %c0_i32_0, %c0_i32_1 : i32, i32, i32
  }
  func.func @transform_10(%arg0: i32) -> (i32, i32, i32) {
    %c0_i32 = arith.constant 0 : i32
    %c0_i32_0 = arith.constant 0 : i32
    %c0_i32_1 = arith.constant 0 : i32
    %c0_i32_2 = arith.constant 0 : i32
    return %c0_i32, %c0_i32_0, %c0_i32_1 : i32, i32, i32
  }
  func.func @transform_11(%arg0: i32) -> (i32, i32, i32) {
    %c0_i32 = arith.constant 0 : i32
    %c0_i32_0 = arith.constant 0 : i32
    %c0_i32_1 = arith.constant 0 : i32
    %c0_i32_2 = arith.constant 0 : i32
    return %c0_i32, %c0_i32_0, %c0_i32_1 : i32, i32, i32
  }
  func.func @transform_12(%arg0: i32) -> (i32, i32, i32) {
    %c0_i32 = arith.constant 0 : i32
    %c0_i32_0 = arith.constant 0 : i32
    %c0_i32_1 = arith.constant 0 : i32
    %c0_i32_2 = arith.constant 0 : i32
    return %c0_i32, %c0_i32_0, %c0_i32_1 : i32, i32, i32
  }
  func.func @transform_13(%arg0: i32) -> (i32, i32, i32) {
    %c0_i32 = arith.constant 0 : i32
    %c0_i32_0 = arith.constant 0 : i32
    %c0_i32_1 = arith.constant 0 : i32
    %c0_i32_2 = arith.constant 0 : i32
    return %c0_i32, %c0_i32_0, %c0_i32_1 : i32, i32, i32
  }
  func.func @transform_14(%arg0: i32) -> (i32, i32) {
    %c0_i32 = arith.constant 0 : i32
    %c0_i32_0 = arith.constant 0 : i32
    %c0_i32_1 = arith.constant 0 : i32
    return %c0_i32, %c0_i32_0 : i32, i32
  }
}

</mosaic_0001>

<bundles_post_ra>
// kernel: gnn_forward.1
= control target key start
LH: loop header
LB: loop body
LE: loop exit
PB: predicated region body
PF: predicated region fallthrough
CT: control target
= control target key end

     0   :  { %v1254_v1 = vmov 0.0   ;;  %vm1255_vm0 = vmmov 0   ;;  %s1608_s0 = inlined_call_operand.vmem [shape: bf16[16,128], index: 0, kind: input, shape index: {}]   ;;  %s1609_s1 = inlined_call_operand.vmem [shape: bf16[16,16], index: 1, kind: input, shape index: {}]   ;;  %s1610_s2 = inlined_call_operand.vmem [shape: f32[16,2], index: 2, kind: input, shape index: {}]   ;;  %s1611_s3 = inlined_call_operand.vmem [shape: f32[16,1], index: 3, kind: input, shape index: {}]   ;;  %s1612_s4 = inlined_call_operand.vmem [shape: bf16[128,128], index: 4, kind: input, shape index: {}]   ;;  %s1613_s5 = inlined_call_operand.vmem [shape: f32[1,128], index: 5, kind: input, shape index: {}]   ;;  %s1614_s6 = inlined_call_operand.vmem [shape: f32[2,2,128], index: 6, kind: input, shape index: {}]   ;;  %s1615_s7 = inlined_call_operand.vmem [shape: f32[2,1,128], index: 7, kind: input, shape index: {}]   ;;  %s1616_s8 = inlined_call_operand.vmem [shape: bf16[2,128,128], index: 8, kind: input, shape index: {}]   ;;  %s1617_s9 = inlined_call_operand.vmem [shape: f32[2,1,128], index: 9, kind: input, shape index: {}]   ;;  %s1618_s10 = inlined_call_operand.vmem [shape: bf16[2,128,128], index: 10, kind: input, shape index: {}]   ;;  %s1619_s11 = inlined_call_operand.vmem [shape: f32[2,1,128], index: 11, kind: input, shape index: {}]   ;;  %s1620_s12 = inlined_call_operand.vmem [shape: f32[2,1,128], index: 12, kind: input, shape index: {}]   ;;  %s1621_s13 = inlined_call_operand.vmem [shape: f32[2,1,128], index: 13, kind: input, shape index: {}]   ;;  %s1622_s14 = inlined_call_operand.hbm [shape: f32[16,128], index: 14, kind: output, shape index: {}]  }
   0x1   :  { %v1186_v0 = vld [vmem:[%s1612_s4 + $0x38] sm:$0xff]   ;;  %1063 = vmatprep.subr.bf16.mxu0 %v1254_v1  ;;  %1083 = vmatprep.subr.bf16.mxu1 %v1254_v1  ;;  %v1187_v2 = vld [vmem:[%s1612_s4 + $0x30] sm:$0xff]   ;;  %v1188_v3 = vld [vmem:[%s1612_s4 + $0x28] sm:$0xff]  }
   0x2   :  { %1064 = vmatpush3.bf16.msra.mxu0 %v1186_v0  ;;  %1079 = vmatprep.mubr.msk.bf16.mxu0 %vm1255_vm0, %v1254_v1  ;;  %v1189_v4 = vld [vmem:[%s1612_s4 + $0x20] sm:$0xff]   ;;  %v1190_v5 = vld [vmem:[%s1612_s4 + $0x18] sm:$0xff]   ;;  %v1191_v6 = vld [vmem:[%s1612_s4 + $0x10] sm:$0xff]  }
   0x3   :  { %1065 = vmatprep.subr.bf16.mxu0 %v1254_v1  ;;  %1085 = vmatprep.mubr.msk.bf16.mxu1 %vm1255_vm0, %v1254_v1  ;;  %v1192_v7 = vld [vmem:[%s1612_s4 + $0x8] sm:$0xff]   ;;  %v1193_v8 = vld [vmem:[%s1612_s4] sm:$0xff]  }
   0x4   :  { %v1194_v9 = vld [vmem:[%s1608_s0] sm:$0xff]  }
   0x6   :  { %1066 = vmatpush3.bf16.msra.mxu0 %v1187_v2 }
   0x7   :  { %1067 = vmatprep.subr.bf16.mxu0 %v1254_v1 }
   0xa   :  { %1068 = vmatpush3.bf16.msra.mxu0 %v1188_v3 }
   0xb   :  { %1069 = vmatprep.subr.bf16.mxu0 %v1254_v1 }
   0xe   :  { %1070 = vmatpush3.bf16.msra.mxu0 %v1189_v4 }
   0xf   :  { %1071 = vmatprep.subr.bf16.mxu0 %v1254_v1 }
  0x12   :  { %1072 = vmatpush3.bf16.msra.mxu0 %v1190_v5 }
  0x13   :  { %1073 = vmatprep.subr.bf16.mxu0 %v1254_v1 }
  0x16   :  { %1074 = vmatpush3.bf16.msra.mxu0 %v1191_v6 }
  0x17   :  { %1075 = vmatprep.subr.bf16.mxu0 %v1254_v1 }
  0x1a   :  { %1076 = vmatpush3.bf16.msra.mxu0 %v1192_v7 }
  0x1b   :  { %1077 = vmatprep.subr.bf16.mxu0 %v1254_v1 }
  0x1e   :  { %1078 = vmatpush3.bf16.msra.mxu0 %v1193_v8 }
  0x1f   :  { %1109 = vmatprep.subr.bf16.mxu0 %v1254_v1 }
  0x20   :  { %19 = vsyncpa [#allocation3], 0  ;;  %v173_v10 = vld [vmem:[%s1611_s3] sm:$0xff]  ;;  %v1256_v12 = vmov 0   ;;  %v174_v13 = vld [vmem:[%s1611_s3 + $0x8] sm:$0xff]  ;;  %v1257_v15 = vmov 1   ;;  %v205_v16 = vlaneseq }
  0x21   :  { %1080 = vmatmul.mubr.bf16.vlgmr.msra.gmra.mxu0 %v1194_v9  ;;  %v171_v11 = vld [vmem:[%s1610_s2] sm:$0xff]  ;;  %1183 = vset.pattern.permute.xlu1 %v1256_v12  ;;  %v172_v14 = vld [vmem:[%s1610_s2 + $0x8] sm:$0xff]  ;;  %vm235_vm1 = vcmask 130048   ;;  %v1196_v31 = vld [vmem:[%s1616_s8 + $0x38] sm:$0xff]  }
  0x22   :  { %1125 = vmatprep.mubr.msk.bf16.mxu0 %vm1255_vm0, %v1254_v1  ;;  %1182 = vset.pattern.permute.xlu0 %v1256_v12  ;;  %v1391_v17 = vshrl.u32 %v205_v16, 7  ;;  %v921_v19 = vld [vmem:[%s1613_s5] ss:$0 sm:$0xff]  ;;  %v954_v22 = vld [vmem:[%s1614_s6 + $0x2] sm:$0x3]  ;;  %v1197_v38 = vld [vmem:[%s1616_s8 + $0x30] sm:$0xff]  }
  0x23   :  { %179 = vperm.xlu0 %1182, %v173_v10   ;;  %197 = vperm.xlu1 %1183, %v171_v11   ;;  %v956_v29 = vld [vmem:[%s1615_s7 + $0x1] ss:$0 sm:$0xff]  ;;  %v1198_v45 = vld [vmem:[%s1616_s8 + $0x28] sm:$0xff]   ;;  %v1200_v53 = vld [vmem:[%s1616_s8 + $0x18] sm:$0xff]  }
  0x24   :  { %v207_v21 = vsub.s32 0, %v1391_v17  ;;  %v1414_v30 = vld [vmem:[%s1609_s1] sm:$0xff]   ;;  %v223_v36 = vsub.s32 1, %v1391_v17  ;;  %v1201_v54 = vld [vmem:[%s1616_s8 + $0x10] sm:$0xff]   ;;  %v1202_v55 = vld [vmem:[%s1616_s8 + $0x8] sm:$0xff]  }
  0x25   :  { %v1199_v50 = vld [vmem:[%s1616_s8 + $0x20] sm:$0xff]   ;;  %v1204_v57 = vld [vmem:[%s1618_s10 + $0x38] sm:$0xff]   ;;  %v1205_v58 = vld [vmem:[%s1618_s10 + $0x30] sm:$0xff]  }
  0x26   :  { %v570_v27 = vrot.slane %v954_v22, %v207_v21  ;;  %v578_v43 = vrot.slane %v954_v22, %v223_v36  ;;  %v1203_v56 = vld [vmem:[%s1616_s8] sm:$0xff]   ;;  %1110 = vmatpush3.bf16.msra.mxu0 %v1204_v57  ;;  %v1206_v59 = vld [vmem:[%s1618_s10 + $0x28] sm:$0xff]   ;;  %v1208_v61 = vld [vmem:[%s1618_s10 + $0x18] sm:$0xff]  }
  0x27   :  { %184 = vperm.xlu0 %1182, %v174_v13   ;;  %202 = vperm.xlu1 %1183, %v172_v14   ;;  %v1207_v60 = vld [vmem:[%s1618_s10 + $0x20] sm:$0xff]   ;;  %v1209_v22 = vld [vmem:[%s1618_s10 + $0x10] sm:$0xff]  }
  0x28   :  { %1111 = vmatprep.subr.bf16.mxu0 %v1254_v1  ;;  %v175_v62 = vld [vmem:[%s1614_s6] sm:$0x3] }
  0x29   :  { %v208_v63 = vrot.slane %v175_v62, %v207_v21  ;;  %v931_v0 = vld [vmem:[%s1615_s7] ss:$0 sm:$0xff]  ;;  %v224_v2 = vrot.slane %v175_v62, %v223_v36 }
  0x2a   :  { %1112 = vmatpush3.bf16.msra.mxu0 %v1205_v58 }
  0x2b   :  { %1184 = vset.pattern.permute.xlu0 %v1257_v15  ;;  %1185 = vset.pattern.permute.xlu1 %v1257_v15 }
  0x2c   :  { %214 = vperm.xlu0 %1184, %v171_v11   ;;  %218 = vperm.xlu1 %1185, %v172_v14  }
  0x2d   :  { %1113 = vmatprep.subr.bf16.mxu0 %v1254_v1 }
  0x2e   :  { %1114 = vmatpush3.bf16.msra.mxu0 %v1206_v59 }
  0x2f   :  { %1115 = vmatprep.subr.bf16.mxu0 %v1254_v1 }
  0x32   :  { %1116 = vmatpush3.bf16.msra.mxu0 %v1207_v60 }
  0x33   :  { %1117 = vmatprep.subr.bf16.mxu0 %v1254_v1 }
  0x36   :  { %1118 = vmatpush3.bf16.msra.mxu0 %v1208_v61 }
  0x37   :  { %1119 = vmatprep.subr.bf16.mxu0 %v1254_v1 }
  0x3a   :  { %1120 = vmatpush3.bf16.msra.mxu0 %v1209_v22  ;;  %v1220_v22 = vld [vmem:[%s1618_s10 + $0x78] sm:$0xff]  }
  0x3b   :  { %1121 = vmatprep.subr.bf16.mxu0 %v1254_v1 }
  0x9e   :  { %v1419_v32 = vpop.permute.xlu0 %179  ;;  %v1421_v33 = vpop.permute.xlu1 %197 }
  0x9f   :  { %v565_v34 = vmul.f32 %v956_v29, %v1419_v32  ;;  %v571_v35 = vmul.f32 %v570_v27, %v1421_v33  ;;  %v193_v3 = vmul.f32 %v931_v0, %v1419_v32  ;;  %v209_v4 = vmul.f32 %v208_v63, %v1421_v33 }
  0xa1   :  { %v573_v37 = vadd.f32 %v571_v35, %v565_v34  ;;  %v211_v8 = vadd.f32 %v209_v4, %v193_v3  ;;  %v952_v4 = vld [vmem:[%s1620_s12] ss:$0 sm:$0xff] }
  0xa2   :  { %v185_v39 = vpop.permute.xlu0 %184  ;;  %v203_v40 = vpop.permute.xlu1 %202 }
  0xa3   :  { %v566_v41 = vmul.f32 %v956_v29, %v185_v39  ;;  %v572_v42 = vmul.f32 %v570_v27, %v203_v40  ;;  %v194_v5 = vmul.f32 %v931_v0, %v185_v39  ;;  %v210_v6 = vmul.f32 %v208_v63, %v203_v40 }
  0xa5   :  { %v574_v44 = vadd.f32 %v572_v42, %v566_v41  ;;  %v212_v9 = vadd.f32 %v210_v6, %v194_v5 }
  0xa7   :  { %v215_v46 = vpop.permute.xlu0 %214  ;;  %v219_v47 = vpop.permute.xlu1 %218 }
  0xa8   :  { %v579_v48 = vmul.f32 %v578_v43, %v215_v46  ;;  %v580_v49 = vmul.f32 %v578_v43, %v219_v47  ;;  %v225_v10 = vmul.f32 %v224_v2, %v215_v46  ;;  %v226_v11 = vmul.f32 %v224_v2, %v219_v47 }
  0xaa   :  { %v1442_v51 = vadd.f32 %v579_v48, %v573_v37  ;;  %v1444_v52 = vadd.f32 %v580_v49, %v574_v44  ;;  %v227_v15 = vadd.f32 %v225_v10, %v211_v8  ;;  %v228_v16 = vadd.f32 %v226_v11, %v212_v9  ;;  %v943_v37 = vld [vmem:[%s1619_s11] ss:$0 sm:$0xff] }
  0xe1   :  { %v162_v18 = vpop.f32.mrf.mxu0 }
  0xe2   :  { %v1400_v24 = vadd.f32 %v921_v19, %v162_v18 }
  0xe3   :  { %v1081_v20 = vpop.f32.mrf.mxu0 }
  0xe5   :  { %v165_v23 = vpop.f32.mrf.mxu0 }
  0xe6   :  { %v1402_v25 = vadd.f32 %v921_v19, %v165_v23  ;;  %v1210_v23 = vld [vmem:[%s1618_s10 + $0x8] sm:$0xff]  }
  0xe7   :  { %v1082_v26 = vpop.f32.mrf.mxu0  ;;  %1122 = vmatpush3.bf16.msra.mxu0 %v1210_v23  ;;  %v1221_v23 = vld [vmem:[%s1618_s10 + $0x70] sm:$0xff]  }
  0xe8   :  { %v229_v28 = vpack.c.bf16 %v1402_v25, %v1400_v24  ;;  %1123 = vmatprep.subr.bf16.mxu0 %v1254_v1 }
  0xea   :  { %1084 = vmatpush3.bf16.msra.mxu1 %v229_v28 }
  0xeb   :  { %1089 = vmatprep.subr.bf16.mxu1 %v1254_v1 }
  0xed   :  { %1086 = vmatmul.mubr.msk.bf16.vlgmr.msra.gmra.mxu1 %vm235_vm1, %v1414_v30 }
  0xee   :  { %1090 = vmatpush3.bf16.msra.mxu1 %v1196_v31  ;;  %1105 = vmatprep.mubr.msk.bf16.mxu1 %vm1255_vm0, %v1254_v1 }
  0xef   :  { %1091 = vmatprep.subr.bf16.mxu1 %v1254_v1 }
  0xf2   :  { %1092 = vmatpush3.bf16.msra.mxu1 %v1197_v38 }
  0xf3   :  { %1093 = vmatprep.subr.bf16.mxu1 %v1254_v1 }
  0xf6   :  { %1094 = vmatpush3.bf16.msra.mxu1 %v1198_v45 }
  0xf7   :  { %1095 = vmatprep.subr.bf16.mxu1 %v1254_v1 }
  0xfa   :  { %1096 = vmatpush3.bf16.msra.mxu1 %v1199_v50 }
  0xfb   :  { %1097 = vmatprep.subr.bf16.mxu1 %v1254_v1 }
  0xfe   :  { %1098 = vmatpush3.bf16.msra.mxu1 %v1200_v53 }
  0xff   :  { %1099 = vmatprep.subr.bf16.mxu1 %v1254_v1 }
 0x102   :  { %1100 = vmatpush3.bf16.msra.mxu1 %v1201_v54 }
 0x103   :  { %1101 = vmatprep.subr.bf16.mxu1 %v1254_v1 }
 0x106   :  { %1102 = vmatpush3.bf16.msra.mxu1 %v1202_v55 }
 0x107   :  { %1103 = vmatprep.subr.bf16.mxu1 %v1254_v1 }
 0x10a   :  { %1104 = vmatpush3.bf16.msra.mxu1 %v1203_v56 }
 0x10b   :  { %1129 = vmatprep.subr.bf16.mxu1 %v1254_v1 }
 0x1ad   :  { %v273_v7 = vpop.f32.mrf.mxu1 }
 0x1ae   :  { %v274_v13 = vadd.f32 %v273_v7, %v1400_v24  ;;  %v1211_v24 = vld [vmem:[%s1618_s10] sm:$0xff]  }
 0x1af   :  { %v1087_v12 = vpop.f32.mrf.mxu1  ;;  %1124 = vmatpush3.bf16.msra.mxu0 %v1211_v24  ;;  %v953_v7 = vld [vmem:[%s1621_s13] ss:$0 sm:$0xff]  ;;  %v1222_v24 = vld [vmem:[%s1618_s10 + $0x68] sm:$0xff]  }
 0x1b0   :  { %v280_v19 = vadd.f32 %v274_v13, %v227_v15  ;;  %1155 = vmatprep.subr.bf16.mxu0 %v1254_v1  ;;  %v1212_v15 = vld [vmem:[%s1616_s8 + $0x78] sm:$0xff]  }
 0x1b1   :  { %v276_v14 = vpop.f32.mrf.mxu1 }
 0x1b2   :  { %v277_v17 = vadd.f32 %v276_v14, %v1402_v25  ;;  %v934_v25 = vld [vmem:[%s1617_s9] ss:$0 sm:$0xff] }
 0x1b3   :  { %v1088_v18 = vpop.f32.mrf.mxu1 }
 0x1b4   :  { %v281_v20 = vadd.f32 %v277_v17, %v228_v16  ;;  %v1213_v16 = vld [vmem:[%s1616_s8 + $0x70] sm:$0xff]   ;;  %v1214_v17 = vld [vmem:[%s1616_s8 + $0x68] sm:$0xff]   ;;  %v1216_v18 = vld [vmem:[%s1616_s8 + $0x58] sm:$0xff]  }
 0x1b6   :  { %v282_v21 = vpack.c.bf16 %v281_v20, %v280_v19  ;;  %v1217_v19 = vld [vmem:[%s1616_s8 + $0x50] sm:$0xff]   ;;  %v1218_v20 = vld [vmem:[%s1616_s8 + $0x48] sm:$0xff]  }
 0x1b8   :  { %1106 = vmatmul.mubr.bf16.vlgmr.msra.gmra.mxu1 %v282_v21  ;;  %v1219_v21 = vld [vmem:[%s1616_s8 + $0x40] sm:$0xff]  }
 0x1b9   :  { %1131 = vmatprep.mubr.msk.bf16.mxu1 %vm1255_vm0, %v1254_v1 }
 0x278   :  { %v388_v26 = vpop.f32.mrf.mxu1 }
 0x279   :  { %v389_v28 = vadd.f32 %v934_v25, %v388_v26  ;;  %v1224_v26 = vld [vmem:[%s1618_s10 + $0x58] sm:$0xff]  }
 0x27a   :  { %v1107_v27 = vpop.f32.mrf.mxu1 }
 0x27b   :  { %v395_v33 = vmax.f32 %v389_v28, 0.0 }
 0x27c   :  { %v391_v29 = vpop.f32.mrf.mxu1 }
 0x27d   :  { %v392_v31 = vadd.f32 %v934_v25, %v391_v29  ;;  %v1223_v25 = vld [vmem:[%s1618_s10 + $0x60] sm:$0xff]  }
 0x27e   :  { %v1108_v32 = vpop.f32.mrf.mxu1 }
 0x27f   :  { %v396_v34 = vmax.f32 %v392_v31, 0.0 }
 0x281   :  { %v397_v35 = vpack.c.bf16 %v396_v34, %v395_v33 }
 0x283   :  { %1126 = vmatmul.mubr.bf16.vlgmr.msra.gmra.mxu0 %v397_v35 }
 0x284   :  { %1171 = vmatprep.mubr.msk.bf16.mxu0 %vm1255_vm0, %v1254_v1  ;;  %1156 = vmatpush3.bf16.msra.mxu0 %v1220_v22 }
 0x285   :  { %1157 = vmatprep.subr.bf16.mxu0 %v1254_v1 }
 0x288   :  { %1158 = vmatpush3.bf16.msra.mxu0 %v1221_v23 }
 0x289   :  { %1159 = vmatprep.subr.bf16.mxu0 %v1254_v1 }
 0x28c   :  { %1160 = vmatpush3.bf16.msra.mxu0 %v1222_v24 }
 0x28d   :  { %1161 = vmatprep.subr.bf16.mxu0 %v1254_v1 }
 0x290   :  { %1162 = vmatpush3.bf16.msra.mxu0 %v1223_v25 }
 0x291   :  { %1163 = vmatprep.subr.bf16.mxu0 %v1254_v1 }
 0x294   :  { %1164 = vmatpush3.bf16.msra.mxu0 %v1224_v26 }
 0x295   :  { %1165 = vmatprep.subr.bf16.mxu0 %v1254_v1 }
 0x343   :  { %v503_v36 = vpop.f32.mrf.mxu0 }
 0x344   :  { %v504_v40 = vadd.f32 %v943_v37, %v503_v36 }
 0x345   :  { %v1127_v38 = vpop.f32.mrf.mxu0 }
 0x346   :  { %v1226_v38 = vld [vmem:[%s1618_s10 + $0x48] sm:$0xff]  }
 0x347   :  { %v506_v39 = vpop.f32.mrf.mxu0 }
 0x348   :  { %v507_v41 = vadd.f32 %v943_v37, %v506_v39  ;;  %v1225_v37 = vld [vmem:[%s1618_s10 + $0x50] sm:$0xff]  }
 0x349   :  { %v1128_v42 = vpop.f32.mrf.mxu0  ;;  %1166 = vmatpush3.bf16.msra.mxu0 %v1225_v37 }
 0x34a   :  { %v510_v43 = vadd.f32 %v507_v41, %v504_v40  ;;  %1167 = vmatprep.subr.bf16.mxu0 %v1254_v1 }
 0x34c   :  { %v511_v44 = vrot.slane %v510_v43, 4 }
 0x34d   :  { %1168 = vmatpush3.bf16.msra.mxu0 %v1226_v38 }
 0x34e   :  { %v512_v45 = vadd.f32 %v511_v44, %v510_v43  ;;  %1169 = vmatprep.subr.bf16.mxu0 %v1254_v1 }
 0x350   :  { %v513_v46 = vrot.slane %v512_v45, 2 }
 0x352   :  { %v514_v47 = vadd.f32 %v513_v46, %v512_v45 }
 0x354   :  { %v515_v48 = vrot.slane %v514_v47, 1 }
 0x356   :  { %v516_v49 = vadd.f32 %v515_v48, %v514_v47  ;;  %v1001_v48 = vld [vmem:[%s1619_s11 + $0x1] ss:$0 sm:$0xff]  ;;  %s1258_s11 = smov [#allocation2]  }
 0x357   :  { %s910_s7 = sshll.u32 %s1258_s11, 4  ;;  %s911_s7 = int_to_ptr.vmem [resolvable:$true] %s910_s7 }
 0x358   :  { %v518_v50 = vmul.f32 0.0625, %v516_v49  ;;  %s1232_s0 = scalar_lea.vmem %s911_s7, 256  ;;  %p1237_p1 = scmp.lt.s32.totalorder %s911_s7, %s911_s7 }
 0x359   :  { %p1233_p0 = scmp.ne.s32.totalorder %s911_s7, %s1232_s0  ;;  %p1238_p2 = scmp.lt.s32.totalorder %s1232_s0, %s1232_s0 }
 0x35a   :  { %v519_v53 = vsub.f32 %v504_v40, %v518_v50  ;;  %v520_v54 = vsub.f32 %v507_v41, %v518_v50 }
 0x35b   :  { %p1239_p3 = por %p1238_p2, %p1237_p1 }
 0x35c   :  { %v521_v55 = vmul.f32 %v519_v53, %v519_v53  ;;  %v522_v56 = vmul.f32 %v520_v54, %v520_v54 }
 0x35d   :  { %p1240_p4 = pnand %p1239_p3, %p1233_p0 }
 0x35e   :  { %v523_v57 = vadd.f32 %v522_v56, %v521_v55 }
 0x360   :  { %v524_v58 = vrot.slane %v523_v57, 4 }
 0x362   :  { %v525_v59 = vadd.f32 %v524_v58, %v523_v57 }
 0x364   :  { %v526_v60 = vrot.slane %v525_v59, 2 }
 0x366   :  { %v527_v61 = vadd.f32 %v526_v60, %v525_v59 }
 0x368   :  { %v528_v62 = vrot.slane %v527_v61, 1 }
 0x36a   :  { %v529_v63 = vadd.f32 %v528_v62, %v527_v61 }
 0x36c   :  { %v530_v0 = vmul.f32 0.0625, %v529_v63 }
 0x36e   :  { %v531_v2 = vadd.f32 1e-05, %v530_v0 }
 0x370   :  { %1228 = vrsqrt.f32 %v531_v2 }
 0x37d   :  { %v1229_v3 = vpop.eup %1228 }
 0x37e   :  { %v533_v5 = vmul.f32 %v1229_v3, %v519_v53  ;;  %v534_v6 = vmul.f32 %v1229_v3, %v520_v54 }
 0x380   :  { %v542_v8 = vmul.f32 %v952_v4, %v533_v5  ;;  %v543_v9 = vmul.f32 %v952_v4, %v534_v6 }
 0x382   :  { %v552_v10 = vadd.f32 %v953_v7, %v543_v9  ;;  %v551_v11 = vadd.f32 %v953_v7, %v542_v8 }
 0x384   :  { %v554_v12 = vmax.f32 %v552_v10, 0.0  ;;  %v553_v13 = vmax.f32 %v551_v11, 0.0 }
 0x386   :  { %v583_v14 = vpack.c.bf16 %v554_v12, %v553_v13 }
 0x388   :  { %1130 = vmatpush3.bf16.msra.mxu1 %v583_v14 }
 0x389   :  { %1135 = vmatprep.subr.bf16.mxu1 %v1254_v1 }
 0x38b   :  { %1132 = vmatmul.mubr.msk.bf16.vlgmr.msra.gmra.mxu1 %vm235_vm1, %v1414_v30  ;;  %v1215_v30 = vld [vmem:[%s1616_s8 + $0x60] sm:$0xff]  }
 0x38c   :  { %1136 = vmatpush3.bf16.msra.mxu1 %v1212_v15  ;;  %1151 = vmatprep.mubr.msk.bf16.mxu1 %vm1255_vm0, %v1254_v1  ;;  %v1011_v15 = vld [vmem:[%s1620_s12 + $0x1] ss:$0 sm:$0xff] }
 0x38d   :  { %1137 = vmatprep.subr.bf16.mxu1 %v1254_v1 }
 0x390   :  { %1138 = vmatpush3.bf16.msra.mxu1 %v1213_v16 }
 0x391   :  { %1139 = vmatprep.subr.bf16.mxu1 %v1254_v1 }
 0x394   :  { %1140 = vmatpush3.bf16.msra.mxu1 %v1214_v17 }
 0x395   :  { %1141 = vmatprep.subr.bf16.mxu1 %v1254_v1 }
 0x398   :  { %1142 = vmatpush3.bf16.msra.mxu1 %v1215_v30  ;;  %v1013_v30 = vld [vmem:[%s1621_s13 + $0x1] ss:$0 sm:$0xff] }
 0x399   :  { %1143 = vmatprep.subr.bf16.mxu1 %v1254_v1 }
 0x39c   :  { %1144 = vmatpush3.bf16.msra.mxu1 %v1216_v18 }
 0x39d   :  { %1145 = vmatprep.subr.bf16.mxu1 %v1254_v1 }
 0x3a0   :  { %1146 = vmatpush3.bf16.msra.mxu1 %v1217_v19 }
 0x3a1   :  { %1147 = vmatprep.subr.bf16.mxu1 %v1254_v1 }
 0x3a4   :  { %1148 = vmatpush3.bf16.msra.mxu1 %v1218_v20 }
 0x3a5   :  { %1149 = vmatprep.subr.bf16.mxu1 %v1254_v1 }
 0x3a8   :  { %1150 = vmatpush3.bf16.msra.mxu1 %v1219_v21 }
 0x44b   :  { %v618_v27 = vpop.f32.mrf.mxu1 }
 0x44c   :  { %v619_v29 = vadd.f32 %v618_v27, %v553_v13 }
 0x44d   :  { %v1133_v28 = vpop.f32.mrf.mxu1 }
 0x44e   :  { %v625_v34 = vadd.f32 %v619_v29, %v1442_v51  ;;  %v1227_v51 = vld [vmem:[%s1618_s10 + $0x40] sm:$0xff]  }
 0x44f   :  { %v621_v31 = vpop.f32.mrf.mxu1  ;;  %1170 = vmatpush3.bf16.msra.mxu0 %v1227_v51 }
 0x450   :  { %v622_v32 = vadd.f32 %v621_v31, %v554_v12 }
 0x451   :  { %v1134_v33 = vpop.f32.mrf.mxu1 }
 0x452   :  { %v626_v35 = vadd.f32 %v622_v32, %v1444_v52  ;;  %v975_v52 = vld [vmem:[%s1617_s9 + $0x1] ss:$0 sm:$0xff] }
 0x454   :  { %v627_v36 = vpack.c.bf16 %v626_v35, %v625_v34 }
 0x456   :  { %1152 = vmatmul.mubr.bf16.vlgmr.msra.gmra.mxu1 %v627_v36 }
 0x516   :  { %v735_v39 = vpop.f32.mrf.mxu1 }
 0x517   :  { %v736_v41 = vadd.f32 %v975_v52, %v735_v39 }
 0x518   :  { %v1153_v40 = vpop.f32.mrf.mxu1 }
 0x519   :  { %v742_v45 = vmax.f32 %v736_v41, 0.0 }
 0x51a   :  { %v738_v42 = vpop.f32.mrf.mxu1 }
 0x51b   :  { %v739_v43 = vadd.f32 %v975_v52, %v738_v42 }
 0x51c   :  { %v1154_v44 = vpop.f32.mrf.mxu1 }
 0x51d   :  { %v743_v46 = vmax.f32 %v739_v43, 0.0 }
 0x51f   :  { %v744_v47 = vpack.c.bf16 %v743_v46, %v742_v45 }
 0x521   :  { %1172 = vmatmul.mubr.bf16.vlgmr.msra.gmra.mxu0 %v744_v47 }
 0x5e1   :  { %v852_v1 = vpop.f32.mrf.mxu0 }
 0x5e2   :  { %v853_v53 = vadd.f32 %v1001_v48, %v852_v1 }
 0x5e3   :  { %v1173_v49 = vpop.f32.mrf.mxu0 }
 0x5e5   :  { %v855_v50 = vpop.f32.mrf.mxu0 }
 0x5e6   :  { %v856_v54 = vadd.f32 %v1001_v48, %v855_v50 }
 0x5e7   :  { %v1174_v55 = vpop.f32.mrf.mxu0 }
 0x5e8   :  { %v859_v56 = vadd.f32 %v856_v54, %v853_v53 }
 0x5ea   :  { %v860_v57 = vrot.slane %v859_v56, 4 }
 0x5ec   :  { %v861_v58 = vadd.f32 %v860_v57, %v859_v56 }
 0x5ee   :  { %v862_v59 = vrot.slane %v861_v58, 2 }
 0x5f0   :  { %v863_v60 = vadd.f32 %v862_v59, %v861_v58 }
 0x5f2   :  { %v864_v61 = vrot.slane %v863_v60, 1 }
 0x5f4   :  { %v865_v62 = vadd.f32 %v864_v61, %v863_v60 }
 0x5f6   :  { %v866_v63 = vmul.f32 0.0625, %v865_v62 }
 0x5f8   :  { %v867_v0 = vsub.f32 %v853_v53, %v866_v63  ;;  %v868_v2 = vsub.f32 %v856_v54, %v866_v63 }
 0x5fa   :  { %v869_v3 = vmul.f32 %v867_v0, %v867_v0  ;;  %v870_v4 = vmul.f32 %v868_v2, %v868_v2 }
 0x5fc   :  { %v871_v5 = vadd.f32 %v870_v4, %v869_v3 }
 0x5fe   :  { %v872_v6 = vrot.slane %v871_v5, 4 }
 0x600   :  { %v873_v7 = vadd.f32 %v872_v6, %v871_v5 }
 0x602   :  { %v874_v8 = vrot.slane %v873_v7, 2 }
 0x604   :  { %v875_v9 = vadd.f32 %v874_v8, %v873_v7 }
 0x606   :  { %v876_v10 = vrot.slane %v875_v9, 1 }
 0x608   :  { %v877_v11 = vadd.f32 %v876_v10, %v875_v9 }
 0x60a   :  { %v878_v12 = vmul.f32 0.0625, %v877_v11 }
 0x60c   :  { %v879_v13 = vadd.f32 1e-05, %v878_v12 }
 0x60e   :  { %1230 = vrsqrt.f32 %v879_v13 }
 0x61b   :  { %v1231_v14 = vpop.eup %1230 }
 0x61c   :  { %v881_v16 = vmul.f32 %v1231_v14, %v867_v0  ;;  %v882_v17 = vmul.f32 %v1231_v14, %v868_v2 }
 0x61e   :  { %v891_v18 = vmul.f32 %v1011_v15, %v881_v16  ;;  %v892_v19 = vmul.f32 %v1011_v15, %v882_v17 }
 0x620   :  { %v902_v20 = vadd.f32 %v1013_v30, %v892_v19  ;;  %v901_v21 = vadd.f32 %v1013_v30, %v891_v18 }
 0x622   :  { %904 = vst [vmem:[#allocation2 + $0x8] sm:$0xff] %v902_v20  ;;  %903 = vst [vmem:[#allocation2] sm:$0xff] %v901_v21 }
 0x623   :  { %1243 = shalt.err (!%p1240_p4)
}
 0x624   :  { %s1259_s12 = smov 128   ;;  %s1260_s18 = smov 8  }
 0x625   :  { %916 = dma.vmem_to_hbm [thread:$0]  %s911_s7, 256, %s1622_s14, [#allocation3], %s1259_s12, %s1259_s12, %s1260_s18  }
 0x626   :  { %1252 = dma.done.wait [#allocation3], 256  }
 0x627   :  { %1253 = vsyncadd [#allocation3], 4294967040 }
 0x628   :  { %920 = vsyncpa [#allocation3], 1 }

</bundles_post_ra>
